<compile_context>
chip_gen: v6e
topology: v6e:2x2x1
jax: 0.10.0
libtpu: 0.0.40
codegen_flags: <defaults>
</compile_context>

<pallas_src>
import jax
import jax.numpy as jnp
from jax.experimental import pallas as pl
from jax.experimental.pallas import tpu as pltpu

_LANE = 128
_SUBLANE = 8
_NEG_INF = -1e30  # bias for padded classes -> prob == 0


def _round_up(x, m):
    return (x + m - 1) // m * m


def _vmem_budgets():
    """Generation-aware VMEM budgets: (vmem_limit_bytes, act_budget_bytes, max_tb)."""
    try:
        cap = int(pltpu.get_tpu_info().vmem_capacity_bytes)
    except Exception:
        cap = 64 * 1024 * 1024  # conservative default (v7x per-TensorCore VMEM)
    vmem_limit = min(cap * 3 // 4, cap - (8 << 20))   # 128 MiB -> 96 MiB, 64 MiB -> 48 MiB
    act_budget = cap * 2 // 5                          # double-buffered activation tiles
    max_tb = 2048 if cap >= (96 << 20) else 512        # bigger tiles on 128 MiB parts
    return vmem_limit, act_budget, max_tb


def _sum_lastdim(x):
    """Last-axis sum: lane-aligned 128-wide VPU adds, then one 128-lane XLU reduce."""
    hw = x.shape[-1]
    if hw < 2 * _LANE:
        return jnp.sum(x, axis=-1)
    n = hw // _LANE
    acc = x[..., 0:_LANE]
    for j in range(1, n):
        acc = acc + x[..., j * _LANE:(j + 1) * _LANE]
    total = jnp.sum(acc, axis=-1)
    rem = hw - n * _LANE
    if rem:
        total = total + jnp.sum(x[..., n * _LANE:], axis=-1)
    return total


def _softmax_rows(logits):
    """Numerically-stable row softmax; EUP approx reciprocal + one Newton step."""
    m = jnp.max(logits, axis=-1, keepdims=True)
    e = jnp.exp(logits - m)
    denom = jnp.sum(e, axis=-1, keepdims=True)
    r = pl.reciprocal(denom, approx=True)
    r = r * (2.0 - denom * r)  # Newton refinement -> ~f32-exact 1/denom, still off the VALU slot
    return e * r


def _pool_head_kernel(x_ref, w_ref, b_ref, probs_ref):
    # x_ref: (tb, C, HW); w_ref: (C, NCpad) with 1/(H*W) pre-folded; b_ref: (1, NCpad).
    x = x_ref[...].astype(jnp.float32)
    pooled = _sum_lastdim(x)                                        # (tb, C)
    logits = jnp.dot(pooled, w_ref[...],
                     preferred_element_type=jnp.float32) + b_ref[...]
    probs_ref[...] = _softmax_rows(logits)


def _pool_head_csplit_kernel(x_ref, w_ref, b_ref, probs_ref, acc_ref):
    # Channel-split reduction path. grid = (batch tiles, C // c_chunk).
    # x_ref: (tb, c_chunk, HW); w_ref: (c_chunk, NCpad); acc_ref: (tb, NCpad) f32.
    k = pl.program_id(1)

    @pl.when(k == 0)
    def _():
        acc_ref[...] = jnp.zeros_like(acc_ref)

    x = x_ref[...].astype(jnp.float32)
    pooled = _sum_lastdim(x)                                        # (tb, c_chunk)
    acc_ref[...] += jnp.dot(pooled, w_ref[...],
                            preferred_element_type=jnp.float32)

    @pl.when(k == pl.num_programs(1) - 1)
    def _():
        probs_ref[...] = _softmax_rows(acc_ref[...] + b_ref[...])


def _choose_batch_tile(B, row_bytes, act_budget, max_tb):
    """Largest multiple-of-8 batch tile whose double-buffered block fits the budget."""
    tb = act_budget // (2 * row_bytes)
    tb = (tb // _SUBLANE) * _SUBLANE
    if tb < _SUBLANE:
        return None                       # even 8 rows don't fit -> channel-split path
    tb = min(tb, max_tb)
    if B <= tb:
        if B >= 16:
            # Never collapse to a single grid step: keep >=2 (ideally 4) blocks so the
            # pipeline overlaps and the "parallel" axis can shard across v7x's two TCs.
            n = 4 if B >= 32 else 2
            tb = _round_up(-(-B // n), _SUBLANE)
        else:
            tb = B                        # tiny batches: one full-extent block
    return tb


def _choose_c_chunk(C, per_c_bytes, act_budget):
    """Largest multiple-of-8 divisor of C whose double-buffered block fits the budget."""
    max_c = max(1, act_budget // (2 * per_c_bytes))
    if max_c >= C:
        return C
    c = min(C, (max_c // _SUBLANE) * _SUBLANE)
    while c >= _SUBLANE:
        if C % c == 0:
            return c
        c -= _SUBLANE
    # No fitting multiple-of-8 divisor: take the smallest legal chunk and let the
    # generation-aware vmem limit absorb the overshoot.
    return _SUBLANE if C % _SUBLANE == 0 else C


def _forward_inference_impl(batch_img, weight, bias, *, _force_c_split=None):
    """Pallas equivalent of AgentBase.forward_inference.

    Args:
        batch_img: (B, C, H, W) float32 / bfloat16 (NCHW, as in PyTorch)
        weight:    (C, class_num)
        bias:      (class_num,)
    Returns:
        probs: (B, class_num) float32
    """
    B, C, H, W = batch_img.shape
    HW = H * W
    NC = weight.shape[1]
    NCpad = _round_up(max(NC, _LANE), _LANE)

    itemsize = jnp.dtype(batch_img.dtype).itemsize
    vmem_limit, act_budget, max_tb = _vmem_budgets()

    # 1/(H*W) mean scale folded into the head weight; classes padded to a full
    # 128-lane tile (lane-dense stores, no vst.msk); padded classes get -1e30
    # bias so their probability is exactly 0 and the wrapper slices them off.
    w_pad = jnp.zeros((C, NCpad), jnp.float32)
    w_pad = w_pad.at[:, :NC].set(weight.astype(jnp.float32) / float(HW))
    b_pad = jnp.full((1, NCpad), _NEG_INF, jnp.float32)
    b_pad = b_pad.at[0, :NC].set(bias.astype(jnp.float32))

    x3d = batch_img.reshape(B, C, HW)
    row_bytes = C * HW * itemsize
    tb = None if _force_c_split is not None else _choose_batch_tile(
        B, row_bytes, act_budget, max_tb)

    if tb is not None:
        # Main path: whole (tb, C, HW) rows streamed over a batch grid; tiny
        # (C, NCpad) weight / (1, NCpad) bias stay VMEM-resident.
        probs_pad = pl.pallas_call(
            _pool_head_kernel,
            out_shape=jax.ShapeDtypeStruct((B, NCpad), jnp.float32),
            grid=(pl.cdiv(B, tb),),
            in_specs=[
                pl.BlockSpec((tb, C, HW), lambda i: (i, 0, 0)),     # streamed activations
                pl.BlockSpec((C, NCpad), lambda i: (0, 0)),         # tiny resident weight
                pl.BlockSpec((1, NCpad), lambda i: (0, 0)),         # tiny resident bias
            ],
            out_specs=pl.BlockSpec((tb, NCpad), lambda i: (i, 0)),
            compiler_params=pltpu.CompilerParams(
                dimension_semantics=("parallel",),
                vmem_limit_bytes=vmem_limit,
            ),
        )(x3d, w_pad, b_pad)
    else:
        # Channel-split path for very large feature maps: trailing "arbitrary"
        # reduction axis over C-chunks with a resident f32 logits accumulator.
        tb = B if B < _SUBLANE else _SUBLANE
        c_chunk = _force_c_split if _force_c_split is not None else _choose_c_chunk(
            C, tb * HW * itemsize, act_budget)
        probs_pad = pl.pallas_call(
            _pool_head_csplit_kernel,
            out_shape=jax.ShapeDtypeStruct((B, NCpad), jnp.float32),
            grid=(pl.cdiv(B, tb), C // c_chunk),
            in_specs=[
                pl.BlockSpec((tb, c_chunk, HW), lambda i, k: (i, k, 0)),
                pl.BlockSpec((c_chunk, NCpad), lambda i, k: (k, 0)),
                pl.BlockSpec((1, NCpad), lambda i, k: (0, 0)),
            ],
            out_specs=pl.BlockSpec((tb, NCpad), lambda i, k: (i, 0)),
            scratch_shapes=[pltpu.VMEM((tb, NCpad), jnp.float32)],
            compiler_params=pltpu.CompilerParams(
                dimension_semantics=("parallel", "arbitrary"),
                vmem_limit_bytes=vmem_limit,
            ),
        )(x3d, w_pad, b_pad)

    return probs_pad[:, :NC]


@jax.jit
def agent_forward_inference(batch_img, weight, bias):
    """Jitted wrapper: padding / scale-fold fuse into the call (no per-call HBM detours)."""
    return _forward_inference_impl(batch_img, weight, bias)


# TODO(synk): forward_loss / forward_eval raise NotImplementedError in the base
# class (no defined computation), and the tensorboard / hook / save / load
# methods are host-side I/O with no kernel equivalent — only forward_inference's
# tensor contract is implemented here.


if __name__ == "__main__":
    B, C, H, W = 2, 4, 16, 16
    NUM_CLASSES = 8

    key = jax.random.PRNGKey(0)
    k_img, k_w, k_b = jax.random.split(key, 3)

    batch_img = jax.random.normal(k_img, (B, C, H, W), dtype=jnp.float32)
    weight = jax.random.normal(k_w, (C, NUM_CLASSES), dtype=jnp.float32) * 0.1
    bias = jax.random.normal(k_b, (NUM_CLASSES,), dtype=jnp.float32) * 0.01

    probs = jax.block_until_ready(agent_forward_inference(batch_img, weight, bias))

    # Reference in plain JAX (same math outside Pallas).
    pooled_ref = jnp.mean(batch_img.reshape(B, C, H * W), axis=-1)
    probs_ref = jax.nn.softmax(pooled_ref @ weight + bias, axis=-1)

    assert probs.shape == (B, NUM_CLASSES)
    assert jnp.allclose(probs, probs_ref, atol=1e-4, rtol=1e-4)
    assert jnp.allclose(jnp.sum(probs, axis=-1), 1.0, atol=1e-4)

    # Also exercise the channel-split reduction path (used when a whole
    # (tb, C, H*W) row does not fit the VMEM activation budget) at a tiny shape.
    Bs, Cs, Hs, Ws = 2, 16, 8, 8
    img_s = jax.random.normal(k_img, (Bs, Cs, Hs, Ws), dtype=jnp.bfloat16)
    w_s = jax.random.normal(k_w, (Cs, NUM_CLASSES), dtype=jnp.float32) * 0.1
    b_s = jax.random.normal(k_b, (NUM_CLASSES,), dtype=jnp.float32) * 0.01
    probs_s = jax.block_until_ready(
        _forward_inference_impl(img_s, w_s, b_s, _force_c_split=8))
    pooled_s = jnp.mean(img_s.astype(jnp.float32).reshape(Bs, Cs, Hs * Ws), axis=-1)
    probs_s_ref = jax.nn.softmax(pooled_s @ w_s + b_s, axis=-1)
    assert probs_s.shape == (Bs, NUM_CLASSES)
    assert jnp.allclose(probs_s, probs_s_ref, atol=1e-3, rtol=1e-3)

    print("KERNEL_OK")
</pallas_src>

<mosaic_0001>
module attributes {stable_mosaic.version = 11 : i64} {
  func.func @_pool_head_kernel(%arg0: i32, %arg1: memref<2x4x256xf32, #tpu.memory_space<vmem>>, %arg2: memref<4x128xf32, #tpu.memory_space<vmem>>, %arg3: memref<1x128xf32, #tpu.memory_space<vmem>>, %arg4: memref<2x128xf32, #tpu.memory_space<vmem>>) attributes {dimension_semantics = [#tpu.dimension_semantics<parallel>], iteration_bounds = array<i64: 1>, scalar_prefetch = 0 : i64, scratch_operands = 0 : i64, tpu.core_type = #tpu.core_type<tc>, window_params = [{transform_indices = @transform_0, window_bounds = array<i64: 2, 4, 256>}, {pipeline_mode = #tpu.pipeline_mode<synchronous>, transform_indices = @transform_1, window_bounds = array<i64: 4, 128>}, {pipeline_mode = #tpu.pipeline_mode<synchronous>, transform_indices = @transform_2, window_bounds = array<i64: 1, 128>}, {transform_indices = @transform_3, window_bounds = array<i64: 2, 128>}]} {
    %c0 = arith.constant 0 : index
    %c0_0 = arith.constant 0 : index
    %c0_1 = arith.constant 0 : index
    %0 = vector.load %arg1[%c0, %c0_0, %c0_1] : memref<2x4x256xf32, #tpu.memory_space<vmem>>, vector<2x4x256xf32>
    %1 = vector.extract_strided_slice %0 {offsets = [0, 0, 0], sizes = [2, 4, 128], strides = [1, 1, 1]} : vector<2x4x256xf32> to vector<2x4x128xf32>
    %2 = vector.extract_strided_slice %0 {offsets = [0, 0, 128], sizes = [2, 4, 128], strides = [1, 1, 1]} : vector<2x4x256xf32> to vector<2x4x128xf32>
    %3 = arith.addf %1, %2 : vector<2x4x128xf32>
    %cst = arith.constant dense<0.000000e+00> : vector<2x4xf32>
    %4 = vector.multi_reduction <add>, %3, %cst [2] : vector<2x4x128xf32> to vector<2x4xf32>
    %c0_2 = arith.constant 0 : index
    %c0_3 = arith.constant 0 : index
    %5 = vector.load %arg2[%c0_2, %c0_3] : memref<4x128xf32, #tpu.memory_space<vmem>>, vector<4x128xf32>
    %cst_4 = arith.constant dense<0.000000e+00> : vector<2x128xf32>
    %6 = tpu.matmul %4, %5, %cst_4 {dimension_numbers = #tpu.dot_dimension_numbers<[1], [0], [0], [1], [0, 0, 1, 1], [], []>} : vector<2x4xf32>, vector<4x128xf32>, vector<2x128xf32> -> vector<2x128xf32>
    %c0_5 = arith.constant 0 : index
    %c0_6 = arith.constant 0 : index
    %7 = vector.load %arg3[%c0_5, %c0_6] : memref<1x128xf32, #tpu.memory_space<vmem>>, vector<1x128xf32>
    %8 = vector.broadcast %7 : vector<1x128xf32> to vector<2x128xf32>
    %9 = arith.addf %6, %8 : vector<2x128xf32>
    %cst_7 = arith.constant dense<0xFF800000> : vector<2xf32>
    %10 = vector.multi_reduction <maximumf>, %9, %cst_7 [1] : vector<2x128xf32> to vector<2xf32>
    %11 = vector.shape_cast %10 : vector<2xf32> to vector<2x1xf32>
    %12 = vector.broadcast %11 : vector<2x1xf32> to vector<2x128xf32>
    %13 = arith.subf %9, %12 : vector<2x128xf32>
    %14 = math.exp %13 : vector<2x128xf32>
    %cst_8 = arith.constant dense<0.000000e+00> : vector<2xf32>
    %15 = vector.multi_reduction <add>, %14, %cst_8 [1] : vector<2x128xf32> to vector<2xf32>
    %16 = vector.shape_cast %15 : vector<2xf32> to vector<2x1xf32>
    %17 = tpu.reciprocal %16 {approx = true} : vector<2x1xf32> -> vector<2x1xf32>
    %18 = arith.mulf %16, %17 : vector<2x1xf32>
    %cst_9 = arith.constant 2.000000e+00 : f32
    %19 = vector.broadcast %cst_9 : f32 to vector<2x1xf32>
    %20 = arith.subf %19, %18 : vector<2x1xf32>
    %21 = arith.mulf %17, %20 : vector<2x1xf32>
    %22 = vector.broadcast %21 : vector<2x1xf32> to vector<2x128xf32>
    %23 = arith.mulf %14, %22 : vector<2x128xf32>
    %c0_10 = arith.constant 0 : index
    %c0_11 = arith.constant 0 : index
    %24 = vector.load %arg4[%c0_10, %c0_11] : memref<2x128xf32, #tpu.memory_space<vmem>>, vector<2x128xf32>
    tpu.vector_store %arg4[%c0_10, %c0_11], %23 {strides = array<i32>} : memref<2x128xf32, #tpu.memory_space<vmem>>, vector<2x128xf32>,
    return
  }
  func.func @transform_0(%arg0: i32) -> (i32, i32, i32) {
    %c0_i32 = arith.constant 0 : i32
    %c0_i32_0 = arith.constant 0 : i32
    %c0_i32_1 = arith.constant 0 : i32
    return %arg0, %c0_i32, %c0_i32_0 : i32, i32, i32
  }
  func.func @transform_1(%arg0: i32) -> (i32, i32) {
    %c0_i32 = arith.constant 0 : i32
    %c0_i32_0 = arith.constant 0 : i32
    %c0_i32_1 = arith.constant 0 : i32
    return %c0_i32, %c0_i32_0 : i32, i32
  }
  func.func @transform_2(%arg0: i32) -> (i32, i32) {
    %c0_i32 = arith.constant 0 : i32
    %c0_i32_0 = arith.constant 0 : i32
    %c0_i32_1 = arith.constant 0 : i32
    return %c0_i32, %c0_i32_0 : i32, i32
  }
  func.func @transform_3(%arg0: i32) -> (i32, i32) {
    %c0_i32 = arith.constant 0 : i32
    %c0_i32_0 = arith.constant 0 : i32
    return %arg0, %c0_i32 : i32, i32
  }
}

</mosaic_0001>

<bundles_post_ra>
// kernel: agent_forward_inference.1
= control target key start
LH: loop header
LB: loop body
LE: loop exit
PB: predicated region body
PF: predicated region fallthrough
CT: control target
= control target key end

     0   :  { %s237_s0 = inlined_call_operand.vmem [shape: f32[2,4,256], index: 0, kind: input, shape index: {}]   ;;  %s238_s1 = inlined_call_operand.vmem [shape: f32[4,128], index: 1, kind: input, shape index: {}]   ;;  %s239_s2 = inlined_call_operand.vmem [shape: f32[1,128], index: 2, kind: input, shape index: {}]   ;;  %s240_s3 = inlined_call_operand.hbm [shape: f32[2,128], index: 3, kind: output, shape index: {}]  }
   0x1   :  { %v15_v0 = vld [vmem:[%s237_s0] sm:$0xff]  ;;  %v16_v1 = vld [vmem:[%s237_s0 + $0x8] sm:$0xff] }
   0x2   :  { %8 = vsyncpa [#allocation3], 0  ;;  %v19_v2 = vrot.slane %v15_v0, 4  ;;  %v20_v3 = vrot.slane %v16_v1, 4  ;;  %vm25_vm0 = vcmask 1043456   ;;  %v199_v9 = vmov 0.0  }
   0x3   :  { %v32_v8 = vld [vmem:[%s238_s1] sm:$0xf]  ;;  %165 = vmatprep.subr.mxu0 %v199_v9  ;;  %vm200_vm1 = vmmov 0   ;;  %v42_v10 = vlaneseq  ;;  %vm52_vm2 = vcmask 1041409   ;;  %vm54_vm3 = vcmask 31744   ;;  %s201_s1 = smov [#allocation2]  }
   0x4   :  { %v23_v4 = vadd.f32 %v19_v2, %v15_v0  ;;  %v24_v5 = vadd.f32 %v20_v3, %v16_v1  ;;  %167 = vmatprep.mubr.msk.f32.mxu0 %vm200_vm1, %v199_v9  ;;  %166 = vmatpush3.msk.msra.mxu0 %vm25_vm0, %v32_v8  ;;  %v160_v19 = vld [vmem:[%s239_s2] ss:$0 sm:$0xff]  ;;  %vm130_vm4 = vcmask 1041408   ;;  %s152_s2 = sshll.u32 %s201_s1, 4  ;;  %s153_s2 = int_to_ptr.vmem [resolvable:$true] %s152_s2 }
   0x5   :  { %v43_v11 = vand.u32 127, %v42_v10  ;;  %v45_v12 = vshrl.u32 %v42_v10, 7  ;;  %s177_s19 = scalar_lea.vmem %s153_s2, 32  ;;  %p182_p1 = scmp.lt.s32.totalorder %s153_s2, %s153_s2 }
   0x6   :  { %v26_v6 = vsel %vm25_vm0, %v23_v4, 0.0  ;;  %v29_v7 = vsel %vm25_vm0, %v24_v5, 0.0  ;;  %p178_p0 = scmp.ne.s32.totalorder %s153_s2, %s177_s19  ;;  %p183_p2 = scmp.lt.s32.totalorder %s177_s19, %s177_s19 }
   0x7   :  { %27 = vadd.xlane.f32.xlu0 %v26_v6  ;;  %v46_v14 = vsub.s32 %v43_v11, %v45_v12 }
   0x8   :  { %p184_p3 = por %p183_p2, %p182_p1 }
   0xa   :  { %p185_p4 = pnand %p184_p3, %p178_p0 }
   0xb   :  { %30 = vadd.xlane.f32.xlu0 %v29_v7 }
  0x90   :  { %v28_v13 = vpop.xlane.xlu0 %27 }
  0x91   :  { %v47_v16 = vrot.slane %v28_v13, %v46_v14 }
  0x94   :  { %v31_v15 = vpop.xlane.xlu0 %30 }
  0x95   :  { %v51_v17 = vrot.slane %v31_v15, %v46_v14 }
  0x97   :  { %v53_v18 = vsel %vm52_vm2, %v51_v17, %v47_v16 }
  0x98   :  { %168 = vmatmul.mubr.msk.f32.vlgmr.msra.gmra.mxu0 %vm54_vm3, %v53_v18 }
 0x158   :  { %v126_v20 = vpop.f32.mrf.mxu0 }
 0x159   :  { %v127_v21 = vadd.f32 %v160_v19, %v126_v20 }
 0x15a   :  { %v169_v22 = vpop.f32.mrf.mxu0 }
 0x15b   :  { %v131_v23 = vsel %vm130_vm4, %v127_v21, -inf }
 0x15c   :  { %132 = vmax.xlane.f32.xlu1 %v131_v23 }
 0x1e5   :  { %v133_v24 = vpop.xlane.xlu1 %132 }
 0x1e6   :  { %v134_v25 = vsub.f32 %v127_v21, %v133_v24 }
 0x1e8   :  { %v135_v26 = vmul.f32 1.442695, %v134_v25 }
 0x1ea   :  { %173 = vpow2.f32 %v135_v26 }
 0x1f7   :  { %v174_v27 = vpop.eup %173 }
 0x1f8   :  { %v137_v28 = vsel %vm130_vm4, %v174_v27, 0.0 }
 0x1f9   :  { %138 = vadd.xlane.f32.xlu1 %v137_v28 }
 0x282   :  { %v139_v29 = vpop.xlane.xlu1 %138 }
 0x283   :  { %175 = vrcp.f32 %v139_v29 }
 0x290   :  { %v176_v30 = vpop.eup %175 }
 0x291   :  { %v141_v31 = vmul.f32 %v176_v30, %v139_v29 }
 0x293   :  { %v142_v32 = vsub.f32 2.0, %v141_v31 }
 0x295   :  { %v143_v33 = vmul.f32 %v176_v30, %v142_v32 }
 0x297   :  { %v144_v34 = vmul.f32 %v174_v27, %v143_v33 }
 0x299   :  { %145 = vst [vmem:[#allocation2] sm:$0x3] %v144_v34 }
 0x29a   :  { %188 = shalt.err (!%p185_p4)
}
 0x29b   :  { %155 = dma.vmem_to_hbm [thread:$0]  %s153_s2, 32, %s240_s3, [#allocation3]  }
 0x29c   :  { %197 = dma.done.wait [#allocation3], 32  }
 0x29d   :  { %198 = vsyncadd [#allocation3], 4294967264 }
 0x29e   :  { %159 = vsyncpa [#allocation3], 1 }

</bundles_post_ra>
